<compile_context>
chip_gen: v6e
topology: v6e:2x2x1
jax: 0.10.0
libtpu: 0.0.40
codegen_flags: <defaults>
</compile_context>

<pallas_src>
import numpy as np

import jax
import jax.numpy as jnp
from jax.experimental import pallas as pl
from jax.experimental.pallas import tpu as pltpu


_CHUNK_THRESHOLD_BYTES = 1 << 20  # 1 MiB: below this, one DMA is already optimal
_MAX_CHUNKS = 8


def _chunk_bounds(shape, dtype):
    """Static (start, size) slices along the leading dim, or None for 1 DMA."""
    if len(shape) == 0:
        return None
    nbytes = int(np.prod(shape, dtype=np.int64)) * np.dtype(dtype).itemsize
    if shape[0] < 2 or nbytes < _CHUNK_THRESHOLD_BYTES:
        return None
    k = int(min(_MAX_CHUNKS, shape[0]))
    lead = int(shape[0])
    base, rem = divmod(lead, k)
    bounds = []
    start = 0
    for c in range(k):
        size = base + (1 if c < rem else 0)
        bounds.append((start, size))
        start += size
    return tuple(bounds)


def _make_select_kernel(n_inputs, chunk_bounds):
    """Kernel args: (idx_smem, x0_hbm, ..., x{n-1}_hbm, out_hbm, dma_sems)."""

    def kernel(idx_ref, *refs):
        x_refs = refs[:n_inputs]
        o_ref = refs[n_inputs]
        sem = refs[n_inputs + 1]

        # Deterministic behavior for out-of-range indices: clamp into [0, n).
        idx = jnp.clip(idx_ref[0], 0, n_inputs - 1)

        # Exactly one branch fires at runtime; each branch copies only the
        # selected tensor HBM -> HBM (no VMEM round-trip).
        for i in range(n_inputs):

            @pl.when(idx == i)
            def _(i=i):
                if chunk_bounds is None:
                    cp = pltpu.make_async_copy(x_refs[i], o_ref, sem.at[0])
                    cp.start()
                    cp.wait()
                else:
                    # K concurrent DMAs over disjoint contiguous slices
                    # (static bounds -> static, contiguous descriptors).
                    copies = []
                    for c, (start, size) in enumerate(chunk_bounds):
                        cp = pltpu.make_async_copy(
                            x_refs[i].at[pl.ds(start, size)],
                            o_ref.at[pl.ds(start, size)],
                            sem.at[c],
                        )
                        cp.start()
                        copies.append(cp)
                    for cp in copies:
                        cp.wait()

    return kernel


def select_input(inputs, index):
    """Pallas equivalent of SelectInput(index)(inputs).

    inputs: list/tuple of same-shaped, same-dtype arrays.
    index:  Python int (static fast path, pure alias) or traced int32 scalar
            (dynamic: single kernel, only the selected tensor is copied).
    """
    inputs = list(inputs)
    n = len(inputs)
    if n == 0:
        raise ValueError("select_input needs at least one candidate input")

    shape = inputs[0].shape
    dtype = inputs[0].dtype
    for x in inputs[1:]:
        if x.shape != shape or x.dtype != dtype:
            raise ValueError("all candidate inputs must share shape and dtype")

    # Static-index fast path: no kernel, no copy — exact PyTorch list indexing
    # semantics (including negative indices / IndexError on out-of-range).
    if isinstance(index, (int, np.integer)):
        return inputs[int(index)]

    idx_arr = jnp.asarray(index, dtype=jnp.int32).reshape((1,))
    chunk_bounds = _chunk_bounds(shape, dtype)
    num_sems = 1 if chunk_bounds is None else len(chunk_bounds)

    grid_spec = pltpu.PrefetchScalarGridSpec(
        num_scalar_prefetch=1,
        grid=(1,),
        # Raw HBM refs: no auto-DMA / blocking — the kernel only touches the
        # selected input, so total HBM traffic is 1 read + 1 write of ONE tensor.
        in_specs=[pl.BlockSpec(memory_space=pl.ANY) for _ in range(n)],
        out_specs=pl.BlockSpec(memory_space=pl.ANY),
        scratch_shapes=[pltpu.SemaphoreType.DMA((num_sems,))],
    )

    return pl.pallas_call(
        _make_select_kernel(n, chunk_bounds),
        out_shape=jax.ShapeDtypeStruct(shape, dtype),
        grid_spec=grid_spec,
        compiler_params=pltpu.CompilerParams(
            dimension_semantics=("arbitrary",)
        ),
    )(idx_arr, *inputs)


if __name__ == "__main__":
    key = jax.random.PRNGKey(0)
    k0, k1, k2, k3, k4 = jax.random.split(key, 5)

    # ---- small NCHW case (module-consistent shapes), dynamic index ----------
    B, C, H, W = 2, 4, 16, 16
    inputs = [
        jax.random.normal(k0, (B, C, H, W), dtype=jnp.float32),
        jax.random.normal(k1, (B, C, H, W), dtype=jnp.float32),
        jax.random.normal(k2, (B, C, H, W), dtype=jnp.float32),
    ]

    # Dynamic (traced) index: switching the index does not recompile.
    select = jax.jit(lambda idx, *xs: select_input(list(xs), idx))

    out1 = jax.block_until_ready(select(jnp.int32(1), *inputs))
    assert out1.shape == inputs[1].shape and out1.dtype == inputs[1].dtype
    assert jnp.array_equal(out1, inputs[1]), "dynamic select mismatch (idx=1)"

    out0 = jax.block_until_ready(select(jnp.int32(0), *inputs))
    assert jnp.array_equal(out0, inputs[0]), "dynamic select mismatch (idx=0)"

    # Out-of-range dynamic index clamps to the last candidate (deterministic).
    out_oob = jax.block_until_ready(select(jnp.int32(7), *inputs))
    assert jnp.array_equal(out_oob, inputs[2]), "clamped select mismatch"

    # ---- static-index fast path: pure alias, no kernel launched -------------
    out_static = select_input(inputs, 2)
    assert jnp.array_equal(out_static, inputs[2]), "static select mismatch"

    # ---- larger tensor exercises the K-way concurrent-DMA path --------------
    big_shape = (32, 8, 32, 32)  # 1 MiB f32 -> chunked into 8 concurrent DMAs
    big_inputs = [
        jax.random.normal(k3, big_shape, dtype=jnp.float32),
        jax.random.normal(k4, big_shape, dtype=jnp.float32),
    ]
    select_big = jax.jit(lambda idx, a, b: select_input([a, b], idx))
    out_big = jax.block_until_ready(select_big(jnp.int32(1), *big_inputs))
    assert jnp.array_equal(out_big, big_inputs[1]), "chunked select mismatch"

    print("KERNEL_OK")
</pallas_src>

<mosaic_0001>
module attributes {stable_mosaic.version = 11 : i64} {
  func.func @kernel(%arg0: i32, %arg1: memref<1xi32, #tpu.memory_space<smem>>, %arg2: memref<2x4x16x16xf32, #tpu.memory_space<any>>, %arg3: memref<2x4x16x16xf32, #tpu.memory_space<any>>, %arg4: memref<2x4x16x16xf32, #tpu.memory_space<any>>, %arg5: memref<2x4x16x16xf32, #tpu.memory_space<any>>, %arg6: memref<1x!tpu.dma_semaphore, #tpu.memory_space<semaphore_mem>>) attributes {dimension_semantics = [#tpu.dimension_semantics<arbitrary>], iteration_bounds = array<i64: 1>, scalar_prefetch = 1 : i64, scratch_operands = 1 : i64, tpu.core_type = #tpu.core_type<tc>, window_params = [{}, {}, {}, {}]} {
    %c0 = arith.constant 0 : index
    %0 = memref.load %arg1[%c0] : memref<1xi32, #tpu.memory_space<smem>>
    %c0_i32 = arith.constant 0 : i32
    %c2_i32 = arith.constant 2 : i32
    %1 = arith.maxsi %c0_i32, %0 : i32
    %2 = arith.minsi %c2_i32, %1 : i32
    %c0_i32_0 = arith.constant 0 : i32
    %3 = arith.cmpi eq, %2, %c0_i32_0 : i32
    %4 = arith.extui %3 : i1 to i32
    %c0_i32_1 = arith.constant 0 : i32
    %5 = arith.cmpi ne, %4, %c0_i32_1 : i32
    scf.if %5 {
      %c0_i32_5 = arith.constant 0 : i32
      %12 = tpu.memref_slice %arg6[%c0_i32_5] : memref<1x!tpu.dma_semaphore, #tpu.memory_space<semaphore_mem>> -> memref<1x!tpu.dma_semaphore, #tpu.memory_space<semaphore_mem>>
      %13 = tpu.memref_squeeze %12 : memref<1x!tpu.dma_semaphore, #tpu.memory_space<semaphore_mem>> -> memref<!tpu.dma_semaphore, #tpu.memory_space<semaphore_mem>>
      tpu.enqueue_dma source(%arg2 : memref<2x4x16x16xf32, #tpu.memory_space<any>>) target(%arg5 : memref<2x4x16x16xf32, #tpu.memory_space<any>>) target_semaphore(%13 : memref<!tpu.dma_semaphore, #tpu.memory_space<semaphore_mem>>)
      %c0_i32_6 = arith.constant 0 : i32
      %14 = tpu.memref_slice %arg6[%c0_i32_6] : memref<1x!tpu.dma_semaphore, #tpu.memory_space<semaphore_mem>> -> memref<1x!tpu.dma_semaphore, #tpu.memory_space<semaphore_mem>>
      %15 = tpu.memref_squeeze %14 : memref<1x!tpu.dma_semaphore, #tpu.memory_space<semaphore_mem>> -> memref<!tpu.dma_semaphore, #tpu.memory_space<semaphore_mem>>
      tpu.wait_dma2 semaphore(%15 : memref<!tpu.dma_semaphore, #tpu.memory_space<semaphore_mem>>) src(%arg2 : memref<2x4x16x16xf32, #tpu.memory_space<any>>) dst(%arg5 : memref<2x4x16x16xf32, #tpu.memory_space<any>>)
    } else {
    }
    %c1_i32 = arith.constant 1 : i32
    %6 = arith.cmpi eq, %2, %c1_i32 : i32
    %7 = arith.extui %6 : i1 to i32
    %c0_i32_2 = arith.constant 0 : i32
    %8 = arith.cmpi ne, %7, %c0_i32_2 : i32
    scf.if %8 {
      %c0_i32_5 = arith.constant 0 : i32
      %12 = tpu.memref_slice %arg6[%c0_i32_5] : memref<1x!tpu.dma_semaphore, #tpu.memory_space<semaphore_mem>> -> memref<1x!tpu.dma_semaphore, #tpu.memory_space<semaphore_mem>>
      %13 = tpu.memref_squeeze %12 : memref<1x!tpu.dma_semaphore, #tpu.memory_space<semaphore_mem>> -> memref<!tpu.dma_semaphore, #tpu.memory_space<semaphore_mem>>
      tpu.enqueue_dma source(%arg3 : memref<2x4x16x16xf32, #tpu.memory_space<any>>) target(%arg5 : memref<2x4x16x16xf32, #tpu.memory_space<any>>) target_semaphore(%13 : memref<!tpu.dma_semaphore, #tpu.memory_space<semaphore_mem>>)
      %c0_i32_6 = arith.constant 0 : i32
      %14 = tpu.memref_slice %arg6[%c0_i32_6] : memref<1x!tpu.dma_semaphore, #tpu.memory_space<semaphore_mem>> -> memref<1x!tpu.dma_semaphore, #tpu.memory_space<semaphore_mem>>
      %15 = tpu.memref_squeeze %14 : memref<1x!tpu.dma_semaphore, #tpu.memory_space<semaphore_mem>> -> memref<!tpu.dma_semaphore, #tpu.memory_space<semaphore_mem>>
      tpu.wait_dma2 semaphore(%15 : memref<!tpu.dma_semaphore, #tpu.memory_space<semaphore_mem>>) src(%arg3 : memref<2x4x16x16xf32, #tpu.memory_space<any>>) dst(%arg5 : memref<2x4x16x16xf32, #tpu.memory_space<any>>)
    } else {
    }
    %c2_i32_3 = arith.constant 2 : i32
    %9 = arith.cmpi eq, %2, %c2_i32_3 : i32
    %10 = arith.extui %9 : i1 to i32
    %c0_i32_4 = arith.constant 0 : i32
    %11 = arith.cmpi ne, %10, %c0_i32_4 : i32
    scf.if %11 {
      %c0_i32_5 = arith.constant 0 : i32
      %12 = tpu.memref_slice %arg6[%c0_i32_5] : memref<1x!tpu.dma_semaphore, #tpu.memory_space<semaphore_mem>> -> memref<1x!tpu.dma_semaphore, #tpu.memory_space<semaphore_mem>>
      %13 = tpu.memref_squeeze %12 : memref<1x!tpu.dma_semaphore, #tpu.memory_space<semaphore_mem>> -> memref<!tpu.dma_semaphore, #tpu.memory_space<semaphore_mem>>
      tpu.enqueue_dma source(%arg4 : memref<2x4x16x16xf32, #tpu.memory_space<any>>) target(%arg5 : memref<2x4x16x16xf32, #tpu.memory_space<any>>) target_semaphore(%13 : memref<!tpu.dma_semaphore, #tpu.memory_space<semaphore_mem>>)
      %c0_i32_6 = arith.constant 0 : i32
      %14 = tpu.memref_slice %arg6[%c0_i32_6] : memref<1x!tpu.dma_semaphore, #tpu.memory_space<semaphore_mem>> -> memref<1x!tpu.dma_semaphore, #tpu.memory_space<semaphore_mem>>
      %15 = tpu.memref_squeeze %14 : memref<1x!tpu.dma_semaphore, #tpu.memory_space<semaphore_mem>> -> memref<!tpu.dma_semaphore, #tpu.memory_space<semaphore_mem>>
      tpu.wait_dma2 semaphore(%15 : memref<!tpu.dma_semaphore, #tpu.memory_space<semaphore_mem>>) src(%arg4 : memref<2x4x16x16xf32, #tpu.memory_space<any>>) dst(%arg5 : memref<2x4x16x16xf32, #tpu.memory_space<any>>)
    } else {
    }
    return
  }
}

</mosaic_0001>

<bundles_post_ra>
// kernel: _lambda_.1
= control target key start
LH: loop header
LB: loop body
LE: loop exit
PB: predicated region body
PF: predicated region fallthrough
CT: control target
= control target key end

     0   :  { %s107_s21 = smov [#allocation2]   ;;  %s108_s22 = smov 131072   ;;  %s162_s0 = inlined_call_operand.<no memory space> [shape: s32[1], index: 0, kind: input, shape index: {}]   ;;  %s163_s2 = inlined_call_operand.hbm [shape: f32[2,4,16,16], index: 2, kind: input, shape index: {}]   ;;  %s164_s3 = inlined_call_operand.hbm [shape: f32[2,4,16,16], index: 3, kind: input, shape index: {}]   ;;  %s165_s1 = inlined_call_operand.hbm [shape: f32[2,4,16,16], index: 1, kind: input, shape index: {}]   ;;  %s166_s4 = inlined_call_operand.hbm [shape: f32[2,4,16,16], index: 4, kind: output, shape index: {}]  }
   0x1   :  { %p11_p0 = scmp.gt.s32.totalorder %s162_s0, 0  ;;  %p69_p1 = scmp.lt.s32.totalorder %s162_s0, 2 }
   0x2   :  { %s109_s23 = smov 0  }
   0x3   :  { %s168_s0 = smov (!%p11_p0, %s162_s0), 0 }
   0x4   :  { %s170_s0 = smov (!%p69_p1, %s168_s0), 2 }
   0x5   :  { %p89_p2 = scmp.eq.s32.totalorder %s170_s0, 0 }
   0x7   :  { %81 = dma.general (%p89_p2), %s165_s1, 2048, %s166_s4, %s107_s21, %s108_s22, [#allocation6], %s109_s23, 0  }
   0x8   :  { %96 = dma.done.wait (%p89_p2), [#allocation2], 2048 }
   0x9   :  { %98 = vsyncadd (%p89_p2), [#allocation2], 4294965248  ;;  %p90_p3 = scmp.eq.s32.totalorder %s170_s0, 1 }
   0xb   :  { %84 = dma.general (%p90_p3), %s163_s2, 2048, %s166_s4, %s107_s21, %s108_s22, [#allocation8], %s109_s23, 0  }
   0xc   :  { %100 = dma.done.wait (%p90_p3), [#allocation2], 2048 }
   0xd   :  { %102 = vsyncadd (%p90_p3), [#allocation2], 4294965248  ;;  %p91_p4 = scmp.eq.s32.totalorder %s170_s0, 2 }
   0xf   :  { %87 = dma.general (%p91_p4), %s164_s3, 2048, %s166_s4, %s107_s21, %s108_s22, [#allocation10], %s109_s23, 0  }
  0x10   :  { %104 = dma.done.wait (%p91_p4), [#allocation2], 2048 }
  0x11   :  { %106 = vsyncadd (%p91_p4), [#allocation2], 4294965248 }
  0x12   :  { %63 = vsyncmov [#allocation2] }
  0x15   :  { %s64_s1 = vpop.sfrf %63 }
  0x16   :  { %p77_p5 = scmp.ne.s32.totalorder %s64_s1, 0 }
  0x18   :  { %68 = shalt.err (%p77_p5)  }

</bundles_post_ra>
